<compile_context>
chip_gen: v6e
topology: v6e:2x2x1
jax: 0.10.0
libtpu: 0.0.40
codegen_flags: <defaults>
</compile_context>

<pallas_src>
import jax
import jax.numpy as jnp
from jax.experimental import pallas as pl
from jax.experimental.pallas import tpu as pltpu


def _round_up(v, m):
    return ((v + m - 1) // m) * m


def learner4_kernel(x_ref, w1_ref, b1_ref, w2_ref, b2_ref,
                    w3_ref, b3_ref, w4_ref, b4_ref, o_ref):
    """One (TM, D) batch tile of the fused forward pass (exact module math)."""
    x = x_ref[...]                                   # (TM, D) fp32 or bf16
    xb = x.astype(jnp.bfloat16)

    # main_path: Linear(D,512) -> ReLU -> Dropout(0, identity) -> Linear(512,D)
    h = jnp.dot(xb, w1_ref[...], preferred_element_type=jnp.float32) + b1_ref[...]
    h = jnp.maximum(h, 0.0)                          # ReLU (fp32 VPU)
    # TODO(synk): Dropout(p=0.0) is the identity in eval / zero-prob mode; no RNG.
    y = jnp.dot(h.astype(jnp.bfloat16), w2_ref[...],
                preferred_element_type=jnp.float32) + b2_ref[...]
    y = y + x.astype(jnp.float32)                    # residual add

    # classifier: Linear(D,32) -> ReLU -> Dropout(0) -> Linear(32,1) -> Sigmoid
    c = jnp.dot(y.astype(jnp.bfloat16), w3_ref[...],
                preferred_element_type=jnp.float32) + b3_ref[...]
    c = jnp.maximum(c, 0.0)
    # Final N=1 layer as a VPU multiply + lane reduction (no degenerate MXU pass).
    logits = jnp.sum(c * w4_ref[...].astype(jnp.float32),
                     axis=-1, keepdims=True) + b4_ref[...]
    o_ref[...] = jax.nn.sigmoid(logits).astype(o_ref.dtype)    # (TM, 1)


def learner4_folded_kernel(x_ref, w1_ref, b1_ref, w23_ref, w3_ref, b23_ref,
                           w4_ref, b4_ref, o_ref):
    """Flag-gated variant with W2@W3 / b2@W3+b3 folded on the host."""
    x = x_ref[...]
    xb = x.astype(jnp.bfloat16)
    h = jnp.maximum(
        jnp.dot(xb, w1_ref[...], preferred_element_type=jnp.float32) + b1_ref[...],
        0.0)
    c = (jnp.dot(h.astype(jnp.bfloat16), w23_ref[...],
                 preferred_element_type=jnp.float32)
         + jnp.dot(xb, w3_ref[...], preferred_element_type=jnp.float32)
         + b23_ref[...])
    c = jnp.maximum(c, 0.0)
    logits = jnp.sum(c * w4_ref[...].astype(jnp.float32),
                     axis=-1, keepdims=True) + b4_ref[...]
    o_ref[...] = jax.nn.sigmoid(logits).astype(o_ref.dtype)


def _pick_tm(B):
    """Batch-tile heuristic per the perf review."""
    if B <= 128:
        # Tiny batch: one sublane-aligned tile; a multi-step 8-row grid would be
        # mostly per-step fill/drain on v5e.
        return max(8, _round_up(B, 8))
    # Large batch: 512-row tiles (multiple of 16 for bf16 sublane packing) to
    # amortize the ~0.35us/step overhead and reach ~85% of the HBM DMA roofline;
    # the ceil(B/2) cap keeps >=2 grid steps so both v7x TensorCores get work.
    # (Sweep 512..1024/2048 per generation if this kernel is hot.)
    return max(16, min(512, _round_up((B + 1) // 2, 16)))


def learner4_forward(x, params, *, tm=None, fold_classifier=False):
    """x: (B, D) float32 or bfloat16.  params: transposed bf16 weights + fp32 biases."""
    B, D = x.shape
    if tm is None:
        tm = _pick_tm(B)
    tm = max(8, _round_up(int(tm), 8))
    # Ragged last tile instead of jnp.pad: rows are independent, Pallas masks the
    # out-of-bounds stores, and the padded input rows only feed output rows that
    # are never written, so no extra HBM copy of x is materialized.
    grid = (pl.cdiv(B, tm),)

    if fold_classifier:
        # Precompute W23 = W2@W3 (512,32) and b23 = b2@W3 + b3 in fp32.
        # (Cache these in production instead of recomputing per call.)
        w3f = params["w3t"].astype(jnp.float32)
        w23 = jnp.dot(params["w2t"].astype(jnp.float32), w3f).astype(jnp.bfloat16)
        b23 = jnp.dot(params["b2"], w3f) + params["b3"]
        weights = (params["w1t"], params["b1"], w23, params["w3t"], b23,
                   params["w4"], params["b4"])
        kernel = learner4_folded_kernel
        flops = 2 * B * (D * 512 + 512 * 32 + D * 32 + 32)
    else:
        weights = (params["w1t"], params["b1"], params["w2t"], params["b2"],
                   params["w3t"], params["b3"], params["w4"], params["b4"])
        kernel = learner4_kernel
        flops = 2 * B * (D * 512 + 512 * D + D * 32 + 32)

    def resident(arr):
        # Full-array block at a constant block index: the pipeline only re-DMAs a
        # block when its index changes, so weights are copied in once and stay
        # VMEM-resident across every grid step.
        return pl.BlockSpec(arr.shape, lambda i: (0, 0))

    weight_bytes = sum(int(a.size) * a.dtype.itemsize for a in weights)

    # Explicit scoped-VMEM budget: double-buffered x tile + resident weights
    # (incl. their idle second buffer) + fp32 intermediates + Mosaic scratch
    # headroom.  v5e's default scoped limit is only 16 MiB; clamp to v7x's
    # 64 MiB physical VMEM.
    x_tile_bytes = tm * D * x.dtype.itemsize
    inter_bytes = tm * (512 + D + 32 + 1) * 4
    vmem_est = 2 * x_tile_bytes + 2 * weight_bytes + inter_bytes + 2 * tm * 4
    vmem_limit = int(max(32 << 20, min(int(vmem_est * 1.4) + (4 << 20), 64 << 20)))

    cost = pl.CostEstimate(
        flops=int(flops),
        transcendentals=int(B),                      # one sigmoid exp per row
        bytes_accessed=int(x.size * x.dtype.itemsize + B * 4 + weight_bytes),
    )

    out = pl.pallas_call(
        kernel,
        out_shape=jax.ShapeDtypeStruct((B, 1), jnp.float32),
        grid_spec=pltpu.PrefetchScalarGridSpec(
            num_scalar_prefetch=0,
            grid=grid,
            in_specs=[pl.BlockSpec((tm, D), lambda i: (i, 0))]   # x: batch-tiled
                     + [resident(a) for a in weights],           # weights: resident
            out_specs=pl.BlockSpec((tm, 1), lambda i: (i, 0)),
        ),
        compiler_params=pltpu.CompilerParams(
            dimension_semantics=("parallel",),       # batch tiles -> both TCs on v7x
            vmem_limit_bytes=vmem_limit,
        ),
        cost_estimate=cost,
    )(x, *weights)
    return out


def init_params(key, input_dim):
    """Deterministic init matching Learner4.weight_init():
    weights ~ xavier_normal_ (stored transposed, bf16), biases ~ PyTorch Linear
    default U(-1/sqrt(fan_in), +1/sqrt(fan_in)) (fp32)."""
    dims = [(input_dim, 512), (512, input_dim), (input_dim, 32), (32, 1)]
    keys = jax.random.split(key, 2 * len(dims))
    params = {}
    for idx, (fan_in, fan_out) in enumerate(dims):
        wk, bk = keys[2 * idx], keys[2 * idx + 1]
        std = (2.0 / (fan_in + fan_out)) ** 0.5      # xavier normal, gain=1
        w_t = std * jax.random.normal(wk, (fan_in, fan_out), dtype=jnp.float32)
        bound = 1.0 / (fan_in ** 0.5)
        b = jax.random.uniform(bk, (1, fan_out), minval=-bound, maxval=bound,
                               dtype=jnp.float32)
        if idx < 3:
            params[f"w{idx + 1}t"] = w_t.astype(jnp.bfloat16)   # bulk weights in bf16
        else:
            params["w4"] = w_t.reshape(1, 32).astype(jnp.float32)  # tiny row, fp32 VPU
        params[f"b{idx + 1}"] = b
    return params


def reference_forward(x, params):
    """Pure-JAX reference of the PyTorch forward, using the same bf16-rounded
    weights / activations as the kernel (fp32 accumulation)."""
    def bdot(a, w_bf16):
        return jnp.dot(a.astype(jnp.bfloat16).astype(jnp.float32),
                       w_bf16.astype(jnp.float32))
    h = jnp.maximum(bdot(x, params["w1t"]) + params["b1"], 0.0)
    y = bdot(h, params["w2t"]) + params["b2"] + x
    c = jnp.maximum(bdot(y, params["w3t"]) + params["b3"], 0.0)
    logits = jnp.sum(c * params["w4"], axis=-1, keepdims=True) + params["b4"]
    return jax.nn.sigmoid(logits)


if __name__ == "__main__":
    # Small shapes consistent with the module: batch=24, input_dim=256
    # (hidden dims 512 / 32 / 1 are fixed by the module).
    B, D = 24, 256
    key = jax.random.PRNGKey(0)
    k_x, k_p = jax.random.split(key)
    x = jax.random.normal(k_x, (B, D), dtype=jnp.float32)
    params = init_params(k_p, D)

    ref = reference_forward(x, params)

    # 1) Default path (auto tm -> single 24-row tile), exact module math.
    out = jax.block_until_ready(learner4_forward(x, params))
    assert out.shape == (B, 1), out.shape
    assert jnp.allclose(out, ref, atol=1e-3, rtol=1e-3), "mismatch vs reference"

    # 2) Multi-step grid with a ragged last tile (tm=16 -> 2 steps, 8 masked rows).
    out2 = jax.block_until_ready(learner4_forward(x, params, tm=16))
    assert jnp.allclose(out2, ref, atol=1e-3, rtol=1e-3), "ragged-tile mismatch"

    # 3) Flag-gated W2@W3 classifier folding (slightly different bf16 rounding).
    out3 = jax.block_until_ready(learner4_forward(x, params, fold_classifier=True))
    assert jnp.allclose(out3, ref, atol=2e-2, rtol=2e-2), "folded-path mismatch"

    # 4) bf16 activations fed from the host (v6e HBM-bound case); residual then
    #    uses bf16-rounded x, so compare with a looser tolerance.
    out4 = jax.block_until_ready(learner4_forward(x.astype(jnp.bfloat16), params))
    assert jnp.allclose(out4, ref, atol=2e-2, rtol=2e-2), "bf16-x mismatch"

    print("KERNEL_OK")
</pallas_src>

<mosaic_0001>
module attributes {stable_mosaic.version = 11 : i64} {
  func.func @learner4_kernel(%arg0: i32, %arg1: memref<24x256xf32, #tpu.memory_space<vmem>>, %arg2: memref<256x512xbf16, #tpu.memory_space<vmem>>, %arg3: memref<1x512xf32, #tpu.memory_space<vmem>>, %arg4: memref<512x256xbf16, #tpu.memory_space<vmem>>, %arg5: memref<1x256xf32, #tpu.memory_space<vmem>>, %arg6: memref<256x32xbf16, #tpu.memory_space<vmem>>, %arg7: memref<1x32xf32, #tpu.memory_space<vmem>>, %arg8: memref<1x32xf32, #tpu.memory_space<vmem>>, %arg9: memref<1x1xf32, #tpu.memory_space<vmem>>, %arg10: memref<24x1xf32, #tpu.memory_space<vmem>>) attributes {dimension_semantics = [#tpu.dimension_semantics<parallel>], iteration_bounds = array<i64: 1>, scalar_prefetch = 0 : i64, scratch_operands = 0 : i64, tpu.core_type = #tpu.core_type<tc>, window_params = [{transform_indices = @transform_0, window_bounds = array<i64: 24, 256>}, {pipeline_mode = #tpu.pipeline_mode<synchronous>, transform_indices = @transform_1, window_bounds = array<i64: 256, 512>}, {pipeline_mode = #tpu.pipeline_mode<synchronous>, transform_indices = @transform_2, window_bounds = array<i64: 1, 512>}, {pipeline_mode = #tpu.pipeline_mode<synchronous>, transform_indices = @transform_3, window_bounds = array<i64: 512, 256>}, {pipeline_mode = #tpu.pipeline_mode<synchronous>, transform_indices = @transform_4, window_bounds = array<i64: 1, 256>}, {pipeline_mode = #tpu.pipeline_mode<synchronous>, transform_indices = @transform_5, window_bounds = array<i64: 256, 32>}, {pipeline_mode = #tpu.pipeline_mode<synchronous>, transform_indices = @transform_6, window_bounds = array<i64: 1, 32>}, {pipeline_mode = #tpu.pipeline_mode<synchronous>, transform_indices = @transform_7, window_bounds = array<i64: 1, 32>}, {pipeline_mode = #tpu.pipeline_mode<synchronous>, transform_indices = @transform_8, window_bounds = array<i64: 1, 1>}, {transform_indices = @transform_9, window_bounds = array<i64: 24, 1>}]} {
    %c0 = arith.constant 0 : index
    %c0_0 = arith.constant 0 : index
    %0 = vector.load %arg1[%c0, %c0_0] : memref<24x256xf32, #tpu.memory_space<vmem>>, vector<24x256xf32>
    %1 = arith.truncf %0 : vector<24x256xf32> to vector<24x256xbf16>
    %c0_1 = arith.constant 0 : index
    %c0_2 = arith.constant 0 : index
    %2 = vector.load %arg2[%c0_1, %c0_2] : memref<256x512xbf16, #tpu.memory_space<vmem>>, vector<256x512xbf16>
    %cst = arith.constant dense<0.000000e+00> : vector<24x512xf32>
    %3 = tpu.matmul %1, %2, %cst {dimension_numbers = #tpu.dot_dimension_numbers<[1], [0], [0], [1], [0, 0, 1, 1], [], []>} : vector<24x256xbf16>, vector<256x512xbf16>, vector<24x512xf32> -> vector<24x512xf32>
    %c0_3 = arith.constant 0 : index
    %c0_4 = arith.constant 0 : index
    %4 = vector.load %arg3[%c0_3, %c0_4] : memref<1x512xf32, #tpu.memory_space<vmem>>, vector<1x512xf32>
    %5 = vector.broadcast %4 : vector<1x512xf32> to vector<24x512xf32>
    %6 = arith.addf %3, %5 : vector<24x512xf32>
    %cst_5 = arith.constant 0.000000e+00 : f32
    %7 = vector.broadcast %cst_5 : f32 to vector<24x512xf32>
    %8 = arith.maximumf %6, %7 : vector<24x512xf32>
    %9 = arith.truncf %8 : vector<24x512xf32> to vector<24x512xbf16>
    %c0_6 = arith.constant 0 : index
    %c0_7 = arith.constant 0 : index
    %10 = vector.load %arg4[%c0_6, %c0_7] : memref<512x256xbf16, #tpu.memory_space<vmem>>, vector<512x256xbf16>
    %cst_8 = arith.constant dense<0.000000e+00> : vector<24x256xf32>
    %11 = tpu.matmul %9, %10, %cst_8 {dimension_numbers = #tpu.dot_dimension_numbers<[1], [0], [0], [1], [0, 0, 1, 1], [], []>} : vector<24x512xbf16>, vector<512x256xbf16>, vector<24x256xf32> -> vector<24x256xf32>
    %c0_9 = arith.constant 0 : index
    %c0_10 = arith.constant 0 : index
    %12 = vector.load %arg5[%c0_9, %c0_10] : memref<1x256xf32, #tpu.memory_space<vmem>>, vector<1x256xf32>
    %13 = vector.broadcast %12 : vector<1x256xf32> to vector<24x256xf32>
    %14 = arith.addf %11, %13 : vector<24x256xf32>
    %15 = arith.addf %14, %0 : vector<24x256xf32>
    %16 = arith.truncf %15 : vector<24x256xf32> to vector<24x256xbf16>
    %c0_11 = arith.constant 0 : index
    %c0_12 = arith.constant 0 : index
    %17 = vector.load %arg6[%c0_11, %c0_12] : memref<256x32xbf16, #tpu.memory_space<vmem>>, vector<256x32xbf16>
    %cst_13 = arith.constant dense<0.000000e+00> : vector<24x32xf32>
    %18 = tpu.matmul %16, %17, %cst_13 {dimension_numbers = #tpu.dot_dimension_numbers<[1], [0], [0], [1], [0, 0, 1, 1], [], []>} : vector<24x256xbf16>, vector<256x32xbf16>, vector<24x32xf32> -> vector<24x32xf32>
    %c0_14 = arith.constant 0 : index
    %c0_15 = arith.constant 0 : index
    %19 = vector.load %arg7[%c0_14, %c0_15] : memref<1x32xf32, #tpu.memory_space<vmem>>, vector<1x32xf32>
    %20 = vector.broadcast %19 : vector<1x32xf32> to vector<24x32xf32>
    %21 = arith.addf %18, %20 : vector<24x32xf32>
    %cst_16 = arith.constant 0.000000e+00 : f32
    %22 = vector.broadcast %cst_16 : f32 to vector<24x32xf32>
    %23 = arith.maximumf %21, %22 : vector<24x32xf32>
    %c0_17 = arith.constant 0 : index
    %c0_18 = arith.constant 0 : index
    %24 = vector.load %arg8[%c0_17, %c0_18] : memref<1x32xf32, #tpu.memory_space<vmem>>, vector<1x32xf32>
    %25 = vector.broadcast %24 : vector<1x32xf32> to vector<24x32xf32>
    %26 = arith.mulf %23, %25 : vector<24x32xf32>
    %cst_19 = arith.constant dense<0.000000e+00> : vector<24xf32>
    %27 = vector.multi_reduction <add>, %26, %cst_19 [1] : vector<24x32xf32> to vector<24xf32>
    %28 = vector.shape_cast %27 : vector<24xf32> to vector<24x1xf32>
    %c0_20 = arith.constant 0 : index
    %c0_21 = arith.constant 0 : index
    %29 = vector.load %arg9[%c0_20, %c0_21] : memref<1x1xf32, #tpu.memory_space<vmem>>, vector<1x1xf32>
    %30 = vector.broadcast %29 : vector<1x1xf32> to vector<24x1xf32>
    %31 = arith.addf %28, %30 : vector<24x1xf32>
    %32 = arith.negf %31 : vector<24x1xf32>
    %33 = math.exp %32 : vector<24x1xf32>
    %cst_22 = arith.constant 1.000000e+00 : f32
    %34 = vector.broadcast %cst_22 : f32 to vector<24x1xf32>
    %35 = arith.addf %34, %33 : vector<24x1xf32>
    %36 = arith.divf %34, %35 : vector<24x1xf32>
    %c0_23 = arith.constant 0 : index
    %c0_24 = arith.constant 0 : index
    %37 = vector.load %arg10[%c0_23, %c0_24] : memref<24x1xf32, #tpu.memory_space<vmem>>, vector<24x1xf32>
    tpu.vector_store %arg10[%c0_23, %c0_24], %36 {strides = array<i32>} : memref<24x1xf32, #tpu.memory_space<vmem>>, vector<24x1xf32>,
    return
  }
  func.func @transform_0(%arg0: i32) -> (i32, i32) {
    %c0_i32 = arith.constant 0 : i32
    %c0_i32_0 = arith.constant 0 : i32
    return %arg0, %c0_i32 : i32, i32
  }
  func.func @transform_1(%arg0: i32) -> (i32, i32) {
    %c0_i32 = arith.constant 0 : i32
    %c0_i32_0 = arith.constant 0 : i32
    %c0_i32_1 = arith.constant 0 : i32
    return %c0_i32, %c0_i32_0 : i32, i32
  }
  func.func @transform_2(%arg0: i32) -> (i32, i32) {
    %c0_i32 = arith.constant 0 : i32
    %c0_i32_0 = arith.constant 0 : i32
    %c0_i32_1 = arith.constant 0 : i32
    return %c0_i32, %c0_i32_0 : i32, i32
  }
  func.func @transform_3(%arg0: i32) -> (i32, i32) {
    %c0_i32 = arith.constant 0 : i32
    %c0_i32_0 = arith.constant 0 : i32
    %c0_i32_1 = arith.constant 0 : i32
    return %c0_i32, %c0_i32_0 : i32, i32
  }
  func.func @transform_4(%arg0: i32) -> (i32, i32) {
    %c0_i32 = arith.constant 0 : i32
    %c0_i32_0 = arith.constant 0 : i32
    %c0_i32_1 = arith.constant 0 : i32
    return %c0_i32, %c0_i32_0 : i32, i32
  }
  func.func @transform_5(%arg0: i32) -> (i32, i32) {
    %c0_i32 = arith.constant 0 : i32
    %c0_i32_0 = arith.constant 0 : i32
    %c0_i32_1 = arith.constant 0 : i32
    return %c0_i32, %c0_i32_0 : i32, i32
  }
  func.func @transform_6(%arg0: i32) -> (i32, i32) {
    %c0_i32 = arith.constant 0 : i32
    %c0_i32_0 = arith.constant 0 : i32
    %c0_i32_1 = arith.constant 0 : i32
    return %c0_i32, %c0_i32_0 : i32, i32
  }
  func.func @transform_7(%arg0: i32) -> (i32, i32) {
    %c0_i32 = arith.constant 0 : i32
    %c0_i32_0 = arith.constant 0 : i32
    %c0_i32_1 = arith.constant 0 : i32
    return %c0_i32, %c0_i32_0 : i32, i32
  }
  func.func @transform_8(%arg0: i32) -> (i32, i32) {
    %c0_i32 = arith.constant 0 : i32
    %c0_i32_0 = arith.constant 0 : i32
    %c0_i32_1 = arith.constant 0 : i32
    return %c0_i32, %c0_i32_0 : i32, i32
  }
  func.func @transform_9(%arg0: i32) -> (i32, i32) {
    %c0_i32 = arith.constant 0 : i32
    %c0_i32_0 = arith.constant 0 : i32
    return %arg0, %c0_i32 : i32, i32
  }
}

</mosaic_0001>

<bundles_post_ra>
// kernel: tpu_custom_call.1
= control target key start
LH: loop header
LB: loop body
LE: loop exit
PB: predicated region body
PF: predicated region fallthrough
CT: control target
= control target key end

     0   :  { %s2009_s0 = inlined_call_operand.vmem [shape: f32[24,256], index: 0, kind: input, shape index: {}]   ;;  %s2010_s1 = inlined_call_operand.hbm [shape: bf16[256,512], index: 1, kind: input, shape index: {}]   ;;  %s2011_s2 = inlined_call_operand.vmem [shape: f32[1,512], index: 2, kind: input, shape index: {}]   ;;  %s2012_s3 = inlined_call_operand.hbm [shape: bf16[512,256], index: 3, kind: input, shape index: {}]   ;;  %s2013_s4 = inlined_call_operand.vmem [shape: f32[1,256], index: 4, kind: input, shape index: {}]   ;;  %s2014_s5 = inlined_call_operand.vmem [shape: bf16[256,32], index: 5, kind: input, shape index: {}]   ;;  %s2015_s6 = inlined_call_operand.vmem [shape: f32[1,32], index: 6, kind: input, shape index: {}]   ;;  %s2016_s7 = inlined_call_operand.vmem [shape: f32[1,32], index: 7, kind: input, shape index: {}]   ;;  %s2017_s8 = inlined_call_operand.<no memory space> [shape: f32[1,1], index: 8, kind: input, shape index: {}]   ;;  %s2018_s9 = inlined_call_operand.vmem [shape: f32[24,1], index: 9, kind: output, shape index: {}]  }
   0x1   :  { %v14_v0 = vstv %s2017_s8 }
   0x2   :  { %15 = vst [vmem:[#allocation2] sm:$0x1] %v14_v0 }
   0x3   :  { %16 = vsyncpa [#allocation4], 0 }
   0x4   :  { %17 = vsyncpa [#allocation6], 0  ;;  %s1817_s11 = smov [#allocation3]  }
   0x5   :  { %s25_s12 = sshll.u32 %s1817_s11, 4  ;;  %s26_s12 = int_to_ptr.vmem [resolvable:$true] %s25_s12 }
   0x6   :  { %s1781_s13 = scalar_lea.vmem %s26_s12, 8192  ;;  %p1786_p1 = scmp.lt.s32.totalorder %s26_s12, %s26_s12 }
   0x7   :  { %p1782_p0 = scmp.ne.s32.totalorder %s26_s12, %s1781_s13  ;;  %p1787_p2 = scmp.lt.s32.totalorder %s1781_s13, %s1781_s13 }
   0x9   :  { %p1788_p3 = por %p1787_p2, %p1786_p1 }
   0xb   :  { %p1789_p4 = pnand %p1788_p3, %p1782_p0 }
   0xd   :  { %1792 = shalt.err (!%p1789_p4)
}
   0xe   :  { %s1818_s14 = smov 256   ;;  %s1819_s15 = smov 16  }
   0xf   :  { %31 = dma.hbm_to_vmem [thread:$0]  %s2010_s1, 8192, %s26_s12, [#allocation4], %s1818_s14, %s1818_s14, %s1819_s15  }
  0x10   :  { %s1820_s8 = smov [#allocation5]  }
  0x11   :  { %s39_s18 = sshll.u32 %s1820_s8, 4  ;;  %s40_s18 = int_to_ptr.vmem [resolvable:$true] %s39_s18 }
  0x12   :  { %s1801_s19 = scalar_lea.vmem %s40_s18, 8192  ;;  %p1806_p6 = scmp.lt.s32.totalorder %s40_s18, %s40_s18 }
  0x13   :  { %p1802_p5 = scmp.ne.s32.totalorder %s40_s18, %s1801_s19  ;;  %p1807_p7 = scmp.lt.s32.totalorder %s1801_s19, %s1801_s19 }
  0x15   :  { %p1808_p8 = por %p1807_p7, %p1806_p6 }
  0x17   :  { %p1809_p9 = pnand %p1808_p8, %p1802_p5 }
  0x19   :  { %1812 = shalt.err (!%p1809_p9)
}
  0x1a   :  { %s1821_s20 = smov 128   ;;  %s1822_s21 = smov 8  }
  0x1b   :  { %45 = dma.hbm_to_vmem [thread:$0]  %s2012_s3, 8192, %s40_s18, [#allocation6], %s1821_s20, %s1821_s20, %s1822_s21  }
  0x1c   :  { %1813 = dma.done.wait [#allocation4], 8192  }
  0x1d   :  { %1814 = vsyncadd [#allocation4], 4294959104 }
  0x1e   :  { %1815 = dma.done.wait [#allocation6], 8192  }
  0x1f   :  { %1816 = vsyncadd [#allocation6], 4294959104  ;;  %v1553_v1 = vld [vmem:[#allocation3 + $0xe4] ss:$16 sps:$4 sm:$0xff]   ;;  %v1555_v2 = vld [vmem:[#allocation3 + $0xec] ss:$16 sps:$4 sm:$0xff]  }
  0x20   :  { %479 = vmatprep.subr.bf16.mxu0 %v1553_v1  ;;  %v1557_v3 = vld [vmem:[#allocation3 + $0xe0] ss:$16 sps:$4 sm:$0xff]   ;;  %v1558_v4 = vld [vmem:[#allocation3 + $0xe8] ss:$16 sps:$4 sm:$0xff]   ;;  %530 = vmatprep.subr.bf16.mxu1 %v1555_v2  ;;  %v1559_v5 = vld [vmem:[#allocation3 + $0xc4] ss:$16 sps:$4 sm:$0xff]  }
  0x21   :  { %480 = vmatpush1.bf16.msra.mxu0 %v1557_v3  ;;  %531 = vmatpush1.bf16.msra.mxu1 %v1558_v4  ;;  %v1561_v6 = vld [vmem:[#allocation3 + $0xcc] ss:$16 sps:$4 sm:$0xff]   ;;  %v1563_v7 = vld [vmem:[#allocation3 + $0xc0] ss:$16 sps:$4 sm:$0xff]   ;;  %v1564_v8 = vld [vmem:[#allocation3 + $0xc8] ss:$16 sps:$4 sm:$0xff]  }
  0x22   :  { %481 = vmatprep.subr.bf16.mxu0 %v1559_v5  ;;  %532 = vmatprep.subr.bf16.mxu1 %v1561_v6  ;;  %v1565_v9 = vld [vmem:[#allocation3 + $0xa4] ss:$16 sps:$4 sm:$0xff]   ;;  %v1567_v10 = vld [vmem:[#allocation3 + $0xac] ss:$16 sps:$4 sm:$0xff]   ;;  %v1569_v11 = vld [vmem:[#allocation3 + $0xa0] ss:$16 sps:$4 sm:$0xff]  }
  0x23   :  { %v1570_v12 = vld [vmem:[#allocation3 + $0xa8] ss:$16 sps:$4 sm:$0xff]   ;;  %v1571_v13 = vld [vmem:[#allocation3 + $0x84] ss:$16 sps:$4 sm:$0xff]   ;;  %v1573_v14 = vld [vmem:[#allocation3 + $0x8c] ss:$16 sps:$4 sm:$0xff]  }
  0x24   :  { %v1575_v15 = vld [vmem:[#allocation3 + $0x80] ss:$16 sps:$4 sm:$0xff]   ;;  %v1576_v16 = vld [vmem:[#allocation3 + $0x88] ss:$16 sps:$4 sm:$0xff]   ;;  %v1577_v17 = vld [vmem:[#allocation3 + $0x64] ss:$16 sps:$4 sm:$0xff]  }
  0x25   :  { %482 = vmatpush1.bf16.msra.mxu0 %v1563_v7  ;;  %533 = vmatpush1.bf16.msra.mxu1 %v1564_v8  ;;  %v1579_v18 = vld [vmem:[#allocation3 + $0x6c] ss:$16 sps:$4 sm:$0xff]   ;;  %v1581_v19 = vld [vmem:[#allocation3 + $0x60] ss:$16 sps:$4 sm:$0xff]   ;;  %v1582_v20 = vld [vmem:[#allocation3 + $0x68] ss:$16 sps:$4 sm:$0xff]  }
  0x26   :  { %483 = vmatprep.subr.bf16.mxu0 %v1565_v9  ;;  %534 = vmatprep.subr.bf16.mxu1 %v1567_v10  ;;  %v1583_v21 = vld [vmem:[#allocation3 + $0x44] ss:$16 sps:$4 sm:$0xff]   ;;  %v1585_v22 = vld [vmem:[#allocation3 + $0x4c] ss:$16 sps:$4 sm:$0xff]   ;;  %v1587_v23 = vld [vmem:[#allocation3 + $0x40] ss:$16 sps:$4 sm:$0xff]  }
  0x27   :  { %v1588_v24 = vld [vmem:[#allocation3 + $0x48] ss:$16 sps:$4 sm:$0xff]   ;;  %v1589_v25 = vld [vmem:[#allocation3 + $0x24] ss:$16 sps:$4 sm:$0xff]   ;;  %v1591_v26 = vld [vmem:[#allocation3 + $0x2c] ss:$16 sps:$4 sm:$0xff]  }
  0x28   :  { %v1593_v27 = vld [vmem:[#allocation3 + $0x20] ss:$16 sps:$4 sm:$0xff]   ;;  %v1594_v28 = vld [vmem:[#allocation3 + $0x28] ss:$16 sps:$4 sm:$0xff]   ;;  %v1595_v29 = vld [vmem:[#allocation3 + $0x4] ss:$16 sps:$4 sm:$0xff]  }
  0x29   :  { %484 = vmatpush1.bf16.msra.mxu0 %v1569_v11  ;;  %535 = vmatpush1.bf16.msra.mxu1 %v1570_v12  ;;  %v1597_v30 = vld [vmem:[#allocation3 + $0xc] ss:$16 sps:$4 sm:$0xff]   ;;  %v1599_v31 = vld [vmem:[#allocation3] ss:$16 sps:$4 sm:$0xff]   ;;  %v1600_v32 = vld [vmem:[#allocation3 + $0x8] ss:$16 sps:$4 sm:$0xff]  }
  0x2a   :  { %485 = vmatprep.subr.bf16.mxu0 %v1571_v13  ;;  %536 = vmatprep.subr.bf16.mxu1 %v1573_v14  ;;  %v1601_v33 = vld [vmem:[#allocation3 + $0x1e4] ss:$16 sps:$4 sm:$0xff]   ;;  %v1603_v34 = vld [vmem:[#allocation3 + $0x1ec] ss:$16 sps:$4 sm:$0xff]   ;;  %v1605_v35 = vld [vmem:[#allocation3 + $0x1e0] ss:$16 sps:$4 sm:$0xff]  }
  0x2b   :  { %v1606_v36 = vld [vmem:[#allocation3 + $0x1e8] ss:$16 sps:$4 sm:$0xff]   ;;  %v1607_v37 = vld [vmem:[#allocation3 + $0x1c4] ss:$16 sps:$4 sm:$0xff]   ;;  %v1609_v38 = vld [vmem:[#allocation3 + $0x1cc] ss:$16 sps:$4 sm:$0xff]  }
  0x2c   :  { %v1611_v39 = vld [vmem:[#allocation3 + $0x1c0] ss:$16 sps:$4 sm:$0xff]   ;;  %v1612_v40 = vld [vmem:[#allocation3 + $0x1c8] ss:$16 sps:$4 sm:$0xff]   ;;  %v1613_v41 = vld [vmem:[#allocation3 + $0x1a4] ss:$16 sps:$4 sm:$0xff]  }
  0x2d   :  { %486 = vmatpush1.bf16.msra.mxu0 %v1575_v15  ;;  %537 = vmatpush1.bf16.msra.mxu1 %v1576_v16  ;;  %v1615_v42 = vld [vmem:[#allocation3 + $0x1ac] ss:$16 sps:$4 sm:$0xff]   ;;  %v1617_v43 = vld [vmem:[#allocation3 + $0x1a0] ss:$16 sps:$4 sm:$0xff]   ;;  %v1618_v44 = vld [vmem:[#allocation3 + $0x1a8] ss:$16 sps:$4 sm:$0xff]  }
  0x2e   :  { %487 = vmatprep.subr.bf16.mxu0 %v1577_v17  ;;  %538 = vmatprep.subr.bf16.mxu1 %v1579_v18  ;;  %v1619_v45 = vld [vmem:[#allocation3 + $0x184] ss:$16 sps:$4 sm:$0xff]   ;;  %v1621_v46 = vld [vmem:[#allocation3 + $0x18c] ss:$16 sps:$4 sm:$0xff]   ;;  %v1623_v49 = vld [vmem:[#allocation3 + $0x180] ss:$16 sps:$4 sm:$0xff]  }
  0x2f   :  { %v1885_v47 = vld [vmem:[%s2009_s0 + $0x8] sm:$0xff]  ;;  %v1890_v48 = vld [vmem:[%s2009_s0 + $0x18] sm:$0xff]  ;;  %v1629_v54 = vld [vmem:[#allocation3 + $0x160] ss:$16 sps:$4 sm:$0xff]   ;;  %vm1305_vm0 = vcmask 261120   ;;  %vm1343_vm1 = vcmask 7168  }
  0x30   :  { %v1624_v50 = vld [vmem:[#allocation3 + $0x188] ss:$16 sps:$4 sm:$0xff]   ;;  %v70_v51 = vpack.c.bf16 %v1890_v48, %v1885_v47  ;;  %v1625_v52 = vld [vmem:[#allocation3 + $0x164] ss:$16 sps:$4 sm:$0xff]   ;;  %v1627_v53 = vld [vmem:[#allocation3 + $0x16c] ss:$16 sps:$4 sm:$0xff]  }
  0x31   :  { %488 = vmatpush1.bf16.msra.mxu0 %v1581_v19  ;;  %539 = vmatpush1.bf16.msra.mxu1 %v1582_v20  ;;  %v1630_v55 = vld [vmem:[#allocation3 + $0x168] ss:$16 sps:$4 sm:$0xff]   ;;  %v1631_v56 = vld [vmem:[#allocation3 + $0x144] ss:$16 sps:$4 sm:$0xff]   ;;  %v1633_v57 = vld [vmem:[#allocation3 + $0x14c] ss:$16 sps:$4 sm:$0xff]  }
  0x32   :  { %489 = vmatprep.subr.bf16.mxu0 %v1583_v21  ;;  %540 = vmatprep.subr.bf16.mxu1 %v1585_v22  ;;  %v1635_v58 = vld [vmem:[#allocation3 + $0x140] ss:$16 sps:$4 sm:$0xff]   ;;  %v1636_v59 = vld [vmem:[#allocation3 + $0x148] ss:$16 sps:$4 sm:$0xff]   ;;  %v1637_v60 = vld [vmem:[#allocation3 + $0x124] ss:$16 sps:$4 sm:$0xff]  }
  0x33   :  { %511 = vmatprep.mubr.bf16.mxu0 %v70_v51  ;;  %562 = vmatprep.mubr.bf16.mxu1 %v70_v51  ;;  %v1639_v61 = vld [vmem:[#allocation3 + $0x12c] ss:$16 sps:$4 sm:$0xff]   ;;  %v1641_v62 = vld [vmem:[#allocation3 + $0x120] ss:$16 sps:$4 sm:$0xff]   ;;  %v1642_v63 = vld [vmem:[#allocation3 + $0x128] ss:$16 sps:$4 sm:$0xff]  }
  0x34   :  { %v1643_v0 = vld [vmem:[#allocation3 + $0x104] ss:$16 sps:$4 sm:$0xff]   ;;  %v1645_v1 = vld [vmem:[#allocation3 + $0x10c] ss:$16 sps:$4 sm:$0xff]   ;;  %v1647_v2 = vld [vmem:[#allocation3 + $0x100] ss:$16 sps:$4 sm:$0xff]  }
  0x35   :  { %490 = vmatpush1.bf16.msra.mxu0 %v1587_v23  ;;  %541 = vmatpush1.bf16.msra.mxu1 %v1588_v24  ;;  %v1648_v3 = vld [vmem:[#allocation3 + $0x108] ss:$16 sps:$4 sm:$0xff]   ;;  %v1897_v4 = vld [vmem:[%s2009_s0] sm:$0xff]  ;;  %v1902_v5 = vld [vmem:[%s2009_s0 + $0x10] sm:$0xff] }
  0x36   :  { %491 = vmatprep.subr.bf16.mxu0 %v1589_v25  ;;  %542 = vmatprep.subr.bf16.mxu1 %v1591_v26  ;;  %v1907_v6 = vld [vmem:[%s2009_s0 + $0x28] sm:$0xff]  ;;  %v1651_v7 = vld [vmem:[#allocation5 + $0x74] ss:$8 sps:$4 sm:$0xff]   ;;  %v69_v9 = vpack.c.bf16 %v1902_v5, %v1897_v4  ;;  %v1649_v11 = vld [vmem:[#allocation5 + $0x70] ss:$8 sps:$4 sm:$0xff]  }
  0x37   :  { %v1654_v8 = vld [vmem:[#allocation5 + $0x174] ss:$8 sps:$4 sm:$0xff]   ;;  %v72_v10 = vpack.c.bf16 %v1907_v6, %v1907_v6  ;;  %v1652_v12 = vld [vmem:[#allocation5 + $0x170] ss:$8 sps:$4 sm:$0xff]   ;;  %v1657_v13 = vld [vmem:[#allocation5 + $0x64] ss:$8 sps:$4 sm:$0xff]  }
  0x38   :  { %v1660_v14 = vld [vmem:[#allocation5 + $0x164] ss:$8 sps:$4 sm:$0xff]   ;;  %v1655_v16 = vld [vmem:[#allocation5 + $0x60] ss:$8 sps:$4 sm:$0xff]   ;;  %v1663_v18 = vld [vmem:[#allocation5 + $0x54] ss:$8 sps:$4 sm:$0xff]  }
  0x39   :  { %492 = vmatpush1.bf16.msra.mxu0 %v1593_v27  ;;  %543 = vmatpush1.bf16.msra.mxu1 %v1594_v28  ;;  %v1916_v15 = vld [vmem:[%s2009_s0 + $0x20] sm:$0xff]  ;;  %v1661_v21 = vld [vmem:[#allocation5 + $0x50] ss:$8 sps:$4 sm:$0xff]  }
  0x3a   :  { %493 = vmatprep.subr.bf16.mxu0 %v1595_v29  ;;  %544 = vmatprep.subr.bf16.mxu1 %v1597_v30  ;;  %v1658_v17 = vld [vmem:[#allocation5 + $0x160] ss:$8 sps:$4 sm:$0xff]   ;;  %v1666_v19 = vld [vmem:[#allocation5 + $0x154] ss:$8 sps:$4 sm:$0xff]   ;;  %v71_v20 = vpack.c.bf16 %v1916_v15, %v1916_v15  ;;  %v1664_v22 = vld [vmem:[#allocation5 + $0x150] ss:$8 sps:$4 sm:$0xff]  }
  0x3b   :  { %v1669_v23 = vld [vmem:[#allocation5 + $0x44] ss:$8 sps:$4 sm:$0xff]   ;;  %v1667_v25 = vld [vmem:[#allocation5 + $0x40] ss:$8 sps:$4 sm:$0xff]   ;;  %v1675_v27 = vld [vmem:[#allocation5 + $0x34] ss:$8 sps:$4 sm:$0xff]  }
  0x3c   :  { %v1672_v24 = vld [vmem:[#allocation5 + $0x144] ss:$8 sps:$4 sm:$0xff]   ;;  %v1670_v26 = vld [vmem:[#allocation5 + $0x140] ss:$8 sps:$4 sm:$0xff]   ;;  %v1678_v28 = vld [vmem:[#allocation5 + $0x134] ss:$8 sps:$4 sm:$0xff]  }
  0x3d   :  { %494 = vmatpush1.bf16.msra.mxu0 %v1599_v31  ;;  %545 = vmatpush1.bf16.msra.mxu1 %v1600_v32  ;;  %v1673_v29 = vld [vmem:[#allocation5 + $0x30] ss:$8 sps:$4 sm:$0xff]   ;;  %v1681_v31 = vld [vmem:[#allocation5 + $0x24] ss:$8 sps:$4 sm:$0xff]   ;;  %v1703_v51 = vld [vmem:[#allocation5 + $0xe0] ss:$8 sps:$4 sm:$0xff]  }
  0x3e   :  { %495 = vmatprep.subr.bf16.mxu0 %v1601_v33  ;;  %546 = vmatprep.subr.bf16.mxu1 %v1603_v34  ;;  %v1676_v30 = vld [vmem:[#allocation5 + $0x130] ss:$8 sps:$4 sm:$0xff]   ;;  %v1684_v32 = vld [vmem:[#allocation5 + $0x124] ss:$8 sps:$4 sm:$0xff]   ;;  %v1679_v33 = vld [vmem:[#allocation5 + $0x20] ss:$8 sps:$4 sm:$0xff]  }
  0x3f   :  { %v1682_v34 = vld [vmem:[#allocation5 + $0x120] ss:$8 sps:$4 sm:$0xff]  }
  0x41   :  { %496 = vmatpush2.bf16.msra.mxu0 %v1605_v35  ;;  %547 = vmatpush2.bf16.msra.mxu1 %v1606_v36  ;;  %v1687_v35 = vld [vmem:[#allocation5 + $0x14] ss:$8 sps:$4 sm:$0xff]  }
  0x42   :  { %497 = vmatprep.subr.bf16.mxu0 %v1607_v37  ;;  %548 = vmatprep.subr.bf16.mxu1 %v1609_v38  ;;  %v1690_v36 = vld [vmem:[#allocation5 + $0x114] ss:$8 sps:$4 sm:$0xff]   ;;  %v1685_v37 = vld [vmem:[#allocation5 + $0x10] ss:$8 sps:$4 sm:$0xff]  }
  0x43   :  { %v1688_v38 = vld [vmem:[#allocation5 + $0x110] ss:$8 sps:$4 sm:$0xff]  }
  0x45   :  { %498 = vmatpush2.bf16.msra.mxu0 %v1611_v39  ;;  %549 = vmatpush2.bf16.msra.mxu1 %v1612_v40  ;;  %v1693_v39 = vld [vmem:[#allocation5 + $0x4] ss:$8 sps:$4 sm:$0xff]  }
  0x46   :  { %499 = vmatprep.subr.bf16.mxu0 %v1613_v41  ;;  %550 = vmatprep.subr.bf16.mxu1 %v1615_v42  ;;  %v1696_v40 = vld [vmem:[#allocation5 + $0x104] ss:$8 sps:$4 sm:$0xff]   ;;  %v1691_v41 = vld [vmem:[#allocation5] ss:$8 sps:$4 sm:$0xff]  }
  0x47   :  { %v1694_v42 = vld [vmem:[#allocation5 + $0x100] ss:$8 sps:$4 sm:$0xff]  }
  0x49   :  { %500 = vmatpush2.bf16.msra.mxu0 %v1617_v43  ;;  %551 = vmatpush2.bf16.msra.mxu1 %v1618_v44  ;;  %v1699_v43 = vld [vmem:[#allocation5 + $0xf4] ss:$8 sps:$4 sm:$0xff]  }
  0x4a   :  { %501 = vmatprep.subr.bf16.mxu0 %v1619_v45  ;;  %552 = vmatprep.subr.bf16.mxu1 %v1621_v46  ;;  %v1702_v44 = vld [vmem:[#allocation5 + $0x1f4] ss:$8 sps:$4 sm:$0xff]   ;;  %v1697_v45 = vld [vmem:[#allocation5 + $0xf0] ss:$8 sps:$4 sm:$0xff]  }
  0x4b   :  { %v1700_v46 = vld [vmem:[#allocation5 + $0x1f0] ss:$8 sps:$4 sm:$0xff]  }
  0x4d   :  { %502 = vmatpush2.bf16.msra.mxu0 %v1623_v49  ;;  %553 = vmatpush2.bf16.msra.mxu1 %v1624_v50  ;;  %v1705_v49 = vld [vmem:[#allocation5 + $0xe4] ss:$8 sps:$4 sm:$0xff]  }
  0x4e   :  { %503 = vmatprep.subr.bf16.mxu0 %v1625_v52  ;;  %554 = vmatprep.subr.bf16.mxu1 %v1627_v53  ;;  %v1708_v50 = vld [vmem:[#allocation5 + $0x1e4] ss:$8 sps:$4 sm:$0xff]   ;;  %v1706_v52 = vld [vmem:[#allocation5 + $0x1e0] ss:$8 sps:$4 sm:$0xff]   ;;  %v1711_v53 = vld [vmem:[#allocation5 + $0xd4] ss:$8 sps:$4 sm:$0xff]  }
  0x51   :  { %504 = vmatpush2.bf16.msra.mxu0 %v1629_v54  ;;  %555 = vmatpush2.bf16.msra.mxu1 %v1630_v55  ;;  %v1714_v54 = vld [vmem:[#allocation5 + $0x1d4] ss:$8 sps:$4 sm:$0xff]   ;;  %v1709_v55 = vld [vmem:[#allocation5 + $0xd0] ss:$8 sps:$4 sm:$0xff]  }
  0x52   :  { %505 = vmatprep.subr.bf16.mxu0 %v1631_v56  ;;  %556 = vmatprep.subr.bf16.mxu1 %v1633_v57  ;;  %v1712_v56 = vld [vmem:[#allocation5 + $0x1d0] ss:$8 sps:$4 sm:$0xff]   ;;  %v1717_v57 = vld [vmem:[#allocation5 + $0xc4] ss:$8 sps:$4 sm:$0xff]  }
  0x55   :  { %506 = vmatpush2.bf16.msra.mxu0 %v1635_v58  ;;  %557 = vmatpush2.bf16.msra.mxu1 %v1636_v59  ;;  %v1720_v58 = vld [vmem:[#allocation5 + $0x1c4] ss:$8 sps:$4 sm:$0xff]   ;;  %v1715_v59 = vld [vmem:[#allocation5 + $0xc0] ss:$8 sps:$4 sm:$0xff]  }
  0x56   :  { %507 = vmatprep.subr.bf16.mxu0 %v1637_v60  ;;  %558 = vmatprep.subr.bf16.mxu1 %v1639_v61  ;;  %v1718_v60 = vld [vmem:[#allocation5 + $0x1c0] ss:$8 sps:$4 sm:$0xff]   ;;  %v1723_v61 = vld [vmem:[#allocation5 + $0xb4] ss:$8 sps:$4 sm:$0xff]  }
  0x59   :  { %508 = vmatpush2.bf16.msra.mxu0 %v1641_v62  ;;  %559 = vmatpush2.bf16.msra.mxu1 %v1642_v63  ;;  %v1726_v62 = vld [vmem:[#allocation5 + $0x1b4] ss:$8 sps:$4 sm:$0xff]   ;;  %v1721_v63 = vld [vmem:[#allocation5 + $0xb0] ss:$8 sps:$4 sm:$0xff]  }
  0x5a   :  { %509 = vmatprep.subr.bf16.mxu0 %v1643_v0  ;;  %560 = vmatprep.subr.bf16.mxu1 %v1645_v1  ;;  %v1724_v0 = vld [vmem:[#allocation5 + $0x1b0] ss:$8 sps:$4 sm:$0xff]   ;;  %v1729_v1 = vld [vmem:[#allocation5 + $0xa4] ss:$8 sps:$4 sm:$0xff]  }
  0x5d   :  { %510 = vmatpush2.bf16.msra.mxu0 %v1647_v2  ;;  %561 = vmatpush2.bf16.msra.mxu1 %v1648_v3  ;;  %v1732_v2 = vld [vmem:[#allocation5 + $0x1a4] ss:$8 sps:$4 sm:$0xff]   ;;  %v1727_v3 = vld [vmem:[#allocation5 + $0xa0] ss:$8 sps:$4 sm:$0xff]  }
  0x5e   :  { %997 = vmatprep.subr.bf16.mxu0 %v1651_v7  ;;  %1048 = vmatprep.subr.bf16.mxu1 %v1654_v8  ;;  %v1730_v7 = vld [vmem:[#allocation5 + $0x1a0] ss:$8 sps:$4 sm:$0xff]   ;;  %v1735_v8 = vld [vmem:[#allocation5 + $0x94] ss:$8 sps:$4 sm:$0xff]  }
  0x60   :  { %512 = vmatmul.mubr.bf16.vlgmr.msra.gmra.mxu0 %v69_v9  ;;  %563 = vmatmul.mubr.bf16.vlgmr.msra.gmra.mxu1 %v69_v9  ;;  %v1738_v9 = vld [vmem:[#allocation5 + $0x194] ss:$8 sps:$4 sm:$0xff]  }
  0x61   :  { %521 = vmatprep.mubr.bf16.mxu0 %v72_v10  ;;  %572 = vmatprep.mubr.bf16.mxu1 %v72_v10  ;;  %v1733_v10 = vld [vmem:[#allocation5 + $0x90] ss:$8 sps:$4 sm:$0xff]  }
  0x62   :  { %998 = vmatpush1.bf16.msra.mxu0 %v1649_v11  ;;  %1049 = vmatpush1.bf16.msra.mxu1 %v1652_v12  ;;  %v1736_v11 = vld [vmem:[#allocation5 + $0x190] ss:$8 sps:$4 sm:$0xff]   ;;  %v1741_v12 = vld [vmem:[#allocation5 + $0x84] ss:$8 sps:$4 sm:$0xff]  }
  0x63   :  { %999 = vmatprep.subr.bf16.mxu0 %v1657_v13  ;;  %1050 = vmatprep.subr.bf16.mxu1 %v1660_v14  ;;  %v1744_v13 = vld [vmem:[#allocation5 + $0x184] ss:$8 sps:$4 sm:$0xff]   ;;  %v1739_v14 = vld [vmem:[#allocation5 + $0x80] ss:$8 sps:$4 sm:$0xff]  }
  0x66   :  { %1000 = vmatpush1.bf16.msra.mxu0 %v1655_v16  ;;  %1051 = vmatpush1.bf16.msra.mxu1 %v1658_v17  ;;  %v1742_v16 = vld [vmem:[#allocation5 + $0x180] ss:$8 sps:$4 sm:$0xff]   ;;  %v1745_v17 = vld [vmem:[%s2014_s5 + $0x78] sm:$0xff]  }
  0x67   :  { %1001 = vmatprep.subr.bf16.mxu0 %v1663_v18  ;;  %1052 = vmatprep.subr.bf16.mxu1 %v1666_v19  ;;  %v139_v18 = vlaneseq }
  0x68   :  { %522 = vmatmul.mubr.bf16.gmra.mxu0 %v71_v20  ;;  %573 = vmatmul.mubr.bf16.gmra.mxu1 %v71_v20 }
  0x69   :  { %v1923_v19 = vshrl.u32 %v139_v18, 7  ;;  %v1748_v18 = vld [vmem:[%s2014_s5 + $0x30] sm:$0xff]  }
  0x6a   :  { %1002 = vmatpush1.bf16.msra.mxu0 %v1661_v21  ;;  %1053 = vmatpush1.bf16.msra.mxu1 %v1664_v22 }
  0x6b   :  { %1003 = vmatprep.subr.bf16.mxu0 %v1669_v23  ;;  %1054 = vmatprep.subr.bf16.mxu1 %v1672_v24  ;;  %v145_v20 = vsub.s32 1, %v1923_v19  ;;  %v153_v21 = vsub.s32 3, %v1923_v19  ;;  %v141_v22 = vsub.s32 0, %v1923_v19  ;;  %v149_v23 = vsub.s32 2, %v1923_v19  ;;  %v137_v24 = vld [vmem:[%s2011_s2] sm:$0xf] }
  0x6e   :  { %1004 = vmatpush1.bf16.msra.mxu0 %v1667_v25  ;;  %1055 = vmatpush1.bf16.msra.mxu1 %v1670_v26 }
  0x6f   :  { %1005 = vmatprep.subr.bf16.mxu0 %v1675_v27  ;;  %1056 = vmatprep.subr.bf16.mxu1 %v1678_v28  ;;  %v146_v27 = vrot.slane %v137_v24, %v145_v20  ;;  %v154_v28 = vrot.slane %v137_v24, %v153_v21 }
  0x72   :  { %1006 = vmatpush1.bf16.msra.mxu0 %v1673_v29  ;;  %1057 = vmatpush1.bf16.msra.mxu1 %v1676_v30  ;;  %v142_v29 = vrot.slane %v137_v24, %v141_v22  ;;  %v150_v30 = vrot.slane %v137_v24, %v149_v23  ;;  %v1749_v23 = vld [vmem:[%s2014_s5 + $0x68] sm:$0xff]  }
  0x73   :  { %1007 = vmatprep.subr.bf16.mxu0 %v1681_v31  ;;  %1058 = vmatprep.subr.bf16.mxu1 %v1684_v32 }
  0x76   :  { %1008 = vmatpush1.bf16.msra.mxu0 %v1679_v33  ;;  %1059 = vmatpush1.bf16.msra.mxu1 %v1682_v34 }
  0x77   :  { %1009 = vmatprep.subr.bf16.mxu0 %v1687_v35  ;;  %1060 = vmatprep.subr.bf16.mxu1 %v1690_v36 }
  0x7a   :  { %1010 = vmatpush1.bf16.msra.mxu0 %v1685_v37  ;;  %1061 = vmatpush1.bf16.msra.mxu1 %v1688_v38 }
  0x7b   :  { %1011 = vmatprep.subr.bf16.mxu0 %v1693_v39  ;;  %1062 = vmatprep.subr.bf16.mxu1 %v1696_v40 }
  0x7e   :  { %1012 = vmatpush1.bf16.msra.mxu0 %v1691_v41  ;;  %1063 = vmatpush1.bf16.msra.mxu1 %v1694_v42 }
  0x7f   :  { %1013 = vmatprep.subr.bf16.mxu0 %v1699_v43  ;;  %1064 = vmatprep.subr.bf16.mxu1 %v1702_v44 }
  0x82   :  { %1014 = vmatpush2.bf16.msra.mxu0 %v1697_v45  ;;  %1065 = vmatpush2.bf16.msra.mxu1 %v1700_v46 }
  0x83   :  { %1015 = vmatprep.subr.bf16.mxu0 %v1705_v49  ;;  %1066 = vmatprep.subr.bf16.mxu1 %v1708_v50 }
  0x86   :  { %1016 = vmatpush2.bf16.msra.mxu0 %v1703_v51  ;;  %1067 = vmatpush2.bf16.msra.mxu1 %v1706_v52 }
  0x87   :  { %1017 = vmatprep.subr.bf16.mxu0 %v1711_v53  ;;  %1068 = vmatprep.subr.bf16.mxu1 %v1714_v54 }
  0x8a   :  { %1018 = vmatpush2.bf16.msra.mxu0 %v1709_v55  ;;  %1069 = vmatpush2.bf16.msra.mxu1 %v1712_v56 }
  0x8b   :  { %1019 = vmatprep.subr.bf16.mxu0 %v1717_v57  ;;  %1070 = vmatprep.subr.bf16.mxu1 %v1720_v58 }
  0x8e   :  { %1020 = vmatpush2.bf16.msra.mxu0 %v1715_v59  ;;  %1071 = vmatpush2.bf16.msra.mxu1 %v1718_v60 }
  0x8f   :  { %1021 = vmatprep.subr.bf16.mxu0 %v1723_v61  ;;  %1072 = vmatprep.subr.bf16.mxu1 %v1726_v62 }
  0x92   :  { %1022 = vmatpush2.bf16.msra.mxu0 %v1721_v63  ;;  %1073 = vmatpush2.bf16.msra.mxu1 %v1724_v0  ;;  %v1746_v0 = vld [vmem:[%s2014_s5 + $0x38] sm:$0xff]  }
  0x93   :  { %1023 = vmatprep.subr.bf16.mxu0 %v1729_v1  ;;  %1074 = vmatprep.subr.bf16.mxu1 %v1732_v2 }
  0x96   :  { %1024 = vmatpush2.bf16.msra.mxu0 %v1727_v3  ;;  %1075 = vmatpush2.bf16.msra.mxu1 %v1730_v7 }
  0x97   :  { %1025 = vmatprep.subr.bf16.mxu0 %v1735_v8  ;;  %1076 = vmatprep.subr.bf16.mxu1 %v1738_v9  ;;  %v1747_v9 = vld [vmem:[%s2014_s5 + $0x70] sm:$0xff]  }
  0x9a   :  { %1026 = vmatpush2.bf16.msra.mxu0 %v1733_v10  ;;  %1077 = vmatpush2.bf16.msra.mxu1 %v1736_v11 }
  0x9b   :  { %1027 = vmatprep.subr.bf16.mxu0 %v1741_v12  ;;  %1078 = vmatprep.subr.bf16.mxu1 %v1744_v13 }
  0x9e   :  { %1028 = vmatpush2.bf16.msra.mxu0 %v1739_v14  ;;  %1079 = vmatpush2.bf16.msra.mxu1 %v1742_v16 }
  0x9f   :  { %1503 = vmatprep.subr.bf16.mxu0 %v1745_v17  ;;  %1531 = vmatprep.subr.bf16.mxu1 %v1745_v17 }
 0x120   :  { %v513_v25 = vpop.f32.mrf.mxu0  ;;  %v564_v26 = vpop.f32.mrf.mxu1 }
 0x121   :  { %v514_v39 = vadd.f32 %v513_v25, %v142_v29  ;;  %v565_v40 = vadd.f32 %v564_v26, %v150_v30  ;;  %v1750_v25 = vld [vmem:[%s2014_s5 + $0x28] sm:$0xff]  }
 0x122   :  { %v515_v31 = vpop.f32.mrf.mxu0  ;;  %v566_v32 = vpop.f32.mrf.mxu1 }
 0x123   :  { %v516_v35 = vadd.f32 %v515_v31, %v146_v27  ;;  %v567_v36 = vadd.f32 %v566_v32, %v154_v28  ;;  %v581_v55 = vmax.f32 %v514_v39, 0.0  ;;  %v583_v56 = vmax.f32 %v565_v40, 0.0  ;;  %v1755_v31 = vld [vmem:[%s2014_s5 + $0x50] sm:$0xff]  }
 0x124   :  { %v517_v33 = vpop.f32.mrf.mxu0  ;;  %v568_v34 = vpop.f32.mrf.mxu1  ;;  %v1756_v32 = vld [vmem:[%s2014_s5 + $0x10] sm:$0xff]  }
 0x125   :  { %v518_v37 = vadd.f32 %v517_v33, %v142_v29  ;;  %v569_v38 = vadd.f32 %v568_v34, %v150_v30  ;;  %v582_v51 = vmax.f32 %v516_v35, 0.0  ;;  %v584_v52 = vmax.f32 %v567_v36, 0.0  ;;  %v1757_v33 = vld [vmem:[%s2014_s5 + $0x48] sm:$0xff]   ;;  %v1759_v35 = vld [vmem:[%s2014_s5 + $0x40] sm:$0xff]  }
 0x126   :  { %v519_v41 = vpop.f32.mrf.mxu0  ;;  %v570_v42 = vpop.f32.mrf.mxu1  ;;  %v1758_v34 = vld [vmem:[%s2014_s5 + $0x8] sm:$0xff]   ;;  %v1760_v36 = vld [vmem:[%s2014_s5] sm:$0xff]  }
 0x127   :  { %v520_v43 = vadd.f32 %v519_v41, %v146_v27  ;;  %v571_v44 = vadd.f32 %v570_v42, %v154_v28  ;;  %v585_v45 = vmax.f32 %v518_v37, 0.0  ;;  %v587_v46 = vmax.f32 %v569_v38, 0.0  ;;  %v665_v37 = vld [vmem:[%s2013_s4] sm:$0x3] }
 0x128   :  { %v523_v49 = vpop.f32.mrf.mxu0  ;;  %v574_v50 = vpop.f32.mrf.mxu1  ;;  %v674_v38 = vrot.slane %v665_v37, %v145_v20  ;;  %v670_v39 = vrot.slane %v665_v37, %v141_v22 }
 0x129   :  { %v586_v53 = vmax.f32 %v520_v43, 0.0  ;;  %v588_v54 = vmax.f32 %v571_v44, 0.0  ;;  %v575_v57 = vadd.f32 %v574_v50, %v150_v30  ;;  %v593_v1 = vpack.c.bf16 %v585_v45, %v581_v55  ;;  %v1754_v30 = vld [vmem:[%s2014_s5 + $0x18] sm:$0xff]  }
 0x12a   :  { %v525_v58 = vpop.f32.mrf.mxu0  ;;  %v576_v59 = vpop.f32.mrf.mxu1  ;;  %v595_v2 = vpack.c.bf16 %v587_v46, %v583_v56  ;;  %v524_v3 = vadd.f32 %v523_v49, %v142_v29  ;;  %v1753_v29 = vld [vmem:[%s2014_s5 + $0x58] sm:$0xff]  }
 0x12b   :  { %v594_v60 = vpack.c.bf16 %v586_v53, %v582_v51  ;;  %v596_v61 = vpack.c.bf16 %v588_v54, %v584_v52  ;;  %v526_v62 = vadd.f32 %v525_v58, %v146_v27  ;;  %v577_v63 = vadd.f32 %v576_v59, %v154_v28  ;;  %v1751_v27 = vld [vmem:[%s2014_s5 + $0x60] sm:$0xff]  }
 0x12c   :  { %v527_v7 = vpop.f32.mrf.mxu0  ;;  %v578_v8 = vpop.f32.mrf.mxu1  ;;  %v591_v12 = vmax.f32 %v575_v57, 0.0  ;;  %v589_v21 = vmax.f32 %v524_v3, 0.0  ;;  %v1752_v28 = vld [vmem:[%s2014_s5 + $0x20] sm:$0xff]  }
 0x12d   :  { %v590_v10 = vmax.f32 %v526_v62, 0.0  ;;  %v592_v11 = vmax.f32 %v577_v63, 0.0  ;;  %1029 = vmatprep.mubr.bf16.mxu0 %v594_v60  ;;  %1080 = vmatprep.mubr.bf16.mxu1 %v596_v61 }
 0x12e   :  { %v528_v13 = vpop.f32.mrf.mxu0  ;;  %v579_v14 = vpop.f32.mrf.mxu1  ;;  %1030 = vmatmul.mubr.bf16.vlgmr.msra.gmra.mxu0 %v593_v1  ;;  %1081 = vmatmul.mubr.bf16.vlgmr.msra.gmra.mxu1 %v595_v2  ;;  %v599_v24 = vpack.c.bf16 %v591_v12, %v591_v12  ;;  %v597_v26 = vpack.c.bf16 %v589_v21, %v589_v21 }
 0x12f   :  { %v598_v16 = vpack.c.bf16 %v590_v10, %v590_v10  ;;  %v600_v17 = vpack.c.bf16 %v592_v11, %v592_v11  ;;  %1504 = vmatpush3.bf16.msra.mxu0 %v1746_v0  ;;  %1539 = vmatpush3.bf16.msra.mxu1 %v1746_v0 }
 0x130   :  { %1505 = vmatprep.subr.bf16.mxu0 %v1747_v9  ;;  %1532 = vmatprep.subr.bf16.mxu1 %v1747_v9 }
 0x131   :  { %1039 = vmatprep.mubr.bf16.mxu0 %v598_v16  ;;  %1090 = vmatprep.mubr.bf16.mxu1 %v600_v17 }
 0x133   :  { %1506 = vmatpush3.bf16.msra.mxu0 %v1748_v18  ;;  %1540 = vmatpush3.bf16.msra.mxu1 %v1748_v18 }
 0x134   :  { %1507 = vmatprep.subr.bf16.mxu0 %v1749_v23  ;;  %1533 = vmatprep.subr.bf16.mxu1 %v1749_v23 }
 0x136   :  { %1040 = vmatmul.mubr.bf16.gmra.mxu0 %v597_v26  ;;  %1091 = vmatmul.mubr.bf16.gmra.mxu1 %v599_v24 }
 0x137   :  { %1508 = vmatpush3.bf16.msra.mxu0 %v1750_v25  ;;  %1541 = vmatpush3.bf16.msra.mxu1 %v1750_v25 }
 0x138   :  { %1509 = vmatprep.subr.bf16.mxu0 %v1751_v27  ;;  %1534 = vmatprep.subr.bf16.mxu1 %v1751_v27 }
 0x13b   :  { %1510 = vmatpush3.bf16.msra.mxu0 %v1752_v28  ;;  %1542 = vmatpush3.bf16.msra.mxu1 %v1752_v28 }
 0x13c   :  { %1511 = vmatprep.subr.bf16.mxu0 %v1753_v29  ;;  %1535 = vmatprep.subr.bf16.mxu1 %v1753_v29 }
 0x13f   :  { %1512 = vmatpush3.bf16.msra.mxu0 %v1754_v30  ;;  %1543 = vmatpush3.bf16.msra.mxu1 %v1754_v30 }
 0x140   :  { %1513 = vmatprep.subr.bf16.mxu0 %v1755_v31  ;;  %1536 = vmatprep.subr.bf16.mxu1 %v1755_v31 }
 0x143   :  { %1514 = vmatpush3.bf16.msra.mxu0 %v1756_v32  ;;  %1544 = vmatpush3.bf16.msra.mxu1 %v1756_v32 }
 0x144   :  { %1515 = vmatprep.subr.bf16.mxu0 %v1757_v33  ;;  %1537 = vmatprep.subr.bf16.mxu1 %v1757_v33 }
 0x147   :  { %1516 = vmatpush3.bf16.msra.mxu0 %v1758_v34  ;;  %1545 = vmatpush3.bf16.msra.mxu1 %v1758_v34 }
 0x148   :  { %1517 = vmatprep.subr.bf16.mxu0 %v1759_v35  ;;  %1538 = vmatprep.subr.bf16.mxu1 %v1759_v35 }
 0x14b   :  { %1518 = vmatpush3.bf16.msra.mxu0 %v1760_v36  ;;  %1546 = vmatpush3.bf16.msra.mxu1 %v1760_v36 }
 0x1ee   :  { %v1031_v40 = vpop.f32.mrf.mxu0  ;;  %v1082_v41 = vpop.f32.mrf.mxu1 }
 0x1ef   :  { %v1032_v45 = vadd.f32 %v1031_v40, %v670_v39 }
 0x1f0   :  { %v1033_v42 = vpop.f32.mrf.mxu0  ;;  %v1084_v43 = vpop.f32.mrf.mxu1 }
 0x1f1   :  { %v1034_v44 = vadd.f32 %v1033_v42, %v674_v38  ;;  %v1083_v56 = vadd.f32 %v1082_v41, %v1032_v45 }
 0x1f2   :  { %v1035_v46 = vpop.f32.mrf.mxu0  ;;  %v1086_v49 = vpop.f32.mrf.mxu1 }
 0x1f3   :  { %v1036_v50 = vadd.f32 %v1035_v46, %v670_v39  ;;  %v1085_v53 = vadd.f32 %v1084_v43, %v1034_v44  ;;  %v1099_v1 = vadd.f32 %v1083_v56, %v1897_v4  ;;  %v1481_v4 = vld [vmem:[%s2015_s6] ss:$0 sm:$0xff] }
 0x1f4   :  { %v1037_v51 = vpop.f32.mrf.mxu0  ;;  %v1088_v52 = vpop.f32.mrf.mxu1 }
 0x1f5   :  { %v1087_v54 = vadd.f32 %v1086_v49, %v1036_v50  ;;  %v1038_v55 = vadd.f32 %v1037_v51, %v674_v38  ;;  %v1100_v61 = vadd.f32 %v1085_v53, %v1885_v47 }
 0x1f6   :  { %v1041_v57 = vpop.f32.mrf.mxu0  ;;  %v1092_v20 = vpop.f32.mrf.mxu1 }
 0x1f7   :  { %v1089_v58 = vadd.f32 %v1088_v52, %v1038_v55  ;;  %v1042_v19 = vadd.f32 %v1041_v57, %v670_v39  ;;  %v1101_v22 = vadd.f32 %v1087_v54, %v1902_v5  ;;  %v1499_v39 = vld [vmem:[#allocation2] ss:$0 sm:$0xff] }
 0x1f8   :  { %v1043_v59 = vpop.f32.mrf.mxu0  ;;  %v1094_v60 = vpop.f32.mrf.mxu1 }
 0x1f9   :  { %v1102_v62 = vadd.f32 %v1089_v58, %v1890_v48  ;;  %v1093_v63 = vadd.f32 %v1092_v20, %v1042_v19  ;;  %v1044_v0 = vadd.f32 %v1043_v59, %v674_v38  ;;  %v1105_v9 = vpack.c.bf16 %v1101_v22, %v1099_v1 }
 0x1fa   :  { %v1045_v2 = vpop.f32.mrf.mxu0  ;;  %v1096_v3 = vpop.f32.mrf.mxu1 }
 0x1fb   :  { %v1095_v7 = vadd.f32 %v1094_v60, %v1044_v0  ;;  %v1106_v8 = vpack.c.bf16 %v1102_v62, %v1100_v61  ;;  %v1103_v10 = vadd.f32 %v1093_v63, %v1916_v15 }
 0x1fc   :  { %v1046_v11 = vpop.f32.mrf.mxu0  ;;  %v1097_v12 = vpop.f32.mrf.mxu1 }
 0x1fd   :  { %v1104_v5 = vadd.f32 %v1095_v7, %v1907_v6  ;;  %1276 = vmatprep.mubr.bf16.mxu0 %v1106_v8  ;;  %v1107_v13 = vpack.c.bf16 %v1103_v10, %v1103_v10  ;;  %v1498_v6 = vld [vmem:[%s2016_s7] ss:$0 sm:$0xff] }
 0x1fe   :  { %1277 = vmatmul.mubr.bf16.vlgmr.msra.gmra.mxu0 %v1105_v9 }
 0x1ff   :  { %v1108_v47 = vpack.c.bf16 %v1104_v5, %v1104_v5 }
 0x201   :  { %1284 = vmatprep.mubr.bf16.mxu1 %v1108_v47 }
 0x202   :  { %1285 = vmatmul.mubr.bf16.vlgmr.msra.gmra.mxu1 %v1107_v13 }
 0x2be   :  { %v1519_v48 = vpop.f32.mrf.mxu0 }
 0x2c0   :  { %v1520_v14 = vpop.f32.mrf.mxu0 }
 0x2c1   :  { %v1521_v16 = vadd.f32 %v1520_v14, %v1519_v48 }
 0x2c2   :  { %v1522_v17 = vpop.f32.mrf.mxu0  ;;  %v1525_v18 = vpop.f32.mrf.mxu1 }
 0x2c3   :  { %v1279_v15 = vadd.f32 %v1521_v16, %v1481_v4 }
 0x2c4   :  { %v1523_v21 = vpop.f32.mrf.mxu0  ;;  %v1526_v23 = vpop.f32.mrf.mxu1 }
 0x2c5   :  { %v1292_v24 = vmax.f32 %v1279_v15, 0.0  ;;  %v1524_v25 = vadd.f32 %v1523_v21, %v1522_v17  ;;  %v1527_v26 = vadd.f32 %v1526_v23, %v1525_v18 }
 0x2c6   :  { %v1528_v27 = vpop.f32.mrf.mxu1 }
 0x2c7   :  { %v1282_v28 = vadd.f32 %v1524_v25, %v1481_v4  ;;  %v1287_v29 = vadd.f32 %v1527_v26, %v1481_v4  ;;  %v1302_v30 = vmul.f32 %v1498_v6, %v1292_v24 }
 0x2c8   :  { %v1529_v31 = vpop.f32.mrf.mxu1 }
 0x2c9   :  { %v1293_v32 = vmax.f32 %v1282_v28, 0.0  ;;  %v1294_v33 = vmax.f32 %v1287_v29, 0.0  ;;  %v1306_v34 = vsel %vm1305_vm0, %v1302_v30, 0.0 }
 0x2ca   :  { %1307 = vadd.xlane.f32.xlu0 %v1306_v34 }
 0x2cb   :  { %v1304_v35 = vmul.f32 %v1498_v6, %v1294_v33  ;;  %v1303_v36 = vmul.f32 %v1498_v6, %v1293_v32 }
 0x2cd   :  { %v1312_v37 = vsel %vm1305_vm0, %v1304_v35, 0.0  ;;  %v1309_v38 = vsel %vm1305_vm0, %v1303_v36, 0.0 }
 0x2ce   :  { %1313 = vadd.xlane.f32.xlu1 %v1312_v37  ;;  %1310 = vadd.xlane.f32.xlu0 %v1309_v38 }
 0x353   :  { %v1308_v40 = vpop.xlane.xlu0 %1307 }
 0x354   :  { %v1322_v41 = vadd.f32 %v1499_v39, %v1308_v40 }
 0x356   :  { %v1500_v42 = vmul.f32 -1.442695, %v1322_v41 }
 0x357   :  { %v1314_v43 = vpop.xlane.xlu1 %1313  ;;  %v1311_v44 = vpop.xlane.xlu0 %1310 }
 0x358   :  { %1761 = vpow2.f32 %v1500_v42  ;;  %v1324_v45 = vadd.f32 %v1499_v39, %v1314_v43  ;;  %v1323_v46 = vadd.f32 %v1499_v39, %v1311_v44 }
 0x35a   :  { %v1502_v49 = vmul.f32 -1.442695, %v1324_v45  ;;  %v1501_v50 = vmul.f32 -1.442695, %v1323_v46 }
 0x35c   :  { %1763 = vpow2.f32 %v1502_v49 }
 0x35d   :  { %1765 = vpow2.f32 %v1501_v50 }
 0x365   :  { %v1762_v51 = vpop.eup %1761 }
 0x366   :  { %v1334_v52 = vadd.f32 1.0, %v1762_v51 }
 0x368   :  { %1767 = vrcp.f32 %v1334_v52 }
 0x369   :  { %v1764_v53 = vpop.eup %1763 }
 0x36a   :  { %v1766_v54 = vpop.eup %1765  ;;  %v1336_v55 = vadd.f32 1.0, %v1764_v53 }
 0x36b   :  { %v1335_v56 = vadd.f32 1.0, %v1766_v54 }
 0x36c   :  { %1769 = vrcp.f32 %v1336_v55 }
 0x36d   :  { %1771 = vrcp.f32 %v1335_v56 }
 0x375   :  { %v1768_v57 = vpop.eup %1767 }
 0x376   :  { %1344 = vst.msk [vmem:[%s2018_s9] sm:$0xff] %vm1343_vm1, %v1768_v57 }
 0x379   :  { %v1770_v20 = vpop.eup %1769 }
 0x37a   :  { %v1772_v58 = vpop.eup %1771  ;;  %1346 = vst.msk [vmem:[%s2018_s9 + $0x10] sm:$0xff] %vm1343_vm1, %v1770_v20 }
 0x37b   :  { %1345 = vst.msk [vmem:[%s2018_s9 + $0x8] sm:$0xff] %vm1343_vm1, %v1772_v58 }
 0x37c   :  { %1351 = vsyncpa [#allocation4], 1 }
 0x37d   :  { %1352 = vsyncpa [#allocation6], 1 }

</bundles_post_ra>
